<compile_context>
chip_gen: v7x
topology: tpu7x:2x2x1
jax: 0.10.0
libtpu: 0.0.40
codegen_flags: <defaults>
</compile_context>

<pallas_src>
import jax
import jax.numpy as jnp
from jax.experimental import pallas as pl
from jax.experimental.pallas import tpu as pltpu


_TILE_BYTES = 4 * 1024 * 1024  # ~4 MiB per row tile (per buffer)


def _nmb_kernel(coef_ref, x_ref, o_ref):
    # coef_ref: SMEM, shape (1,), float32 -- the scalar coefficient parameter.
    # x_ref / o_ref: VMEM, one (tile_r, lanes) tile.
    # Cast the scalar once per grid step so the multiply stays in the tensor's
    # native dtype (no per-element f32 promotion when x is bf16).
    c = coef_ref[0].astype(x_ref.dtype)
    o_ref[...] = c * x_ref[...]


def _choose_layout(total, itemsize):
    """Pick (lanes, rows, tile_r) for a lane-dense, row-tiled 2-D view."""
    lanes = None
    for cand in (1024, 512, 256, 128):
        if total % cand == 0:
            lanes = cand
            break
    if lanes is None:
        lanes = 512  # ragged element count: pad the flat array up to a lane multiple

    rows = -(-total // lanes)  # ceil division
    # Row-tile size targeting ~_TILE_BYTES per tile; keep it a multiple of 8
    # so (tile_r, lanes) satisfies the (8, 128) block divisibility rule.
    tile_r = max(8, (_TILE_BYTES // (lanes * itemsize)) // 8 * 8)
    if rows <= tile_r:
        # Single tile: block_shape == full array shape (always a legal block).
        tile_r = rows
    return lanes, rows, tile_r


def nmb_forward(x, coefficient):
    """coefficient: jnp array of shape (1,), float32 (like nn.Parameter([0.0]))."""
    # TODO(synk): in production this scalar multiply should be fused into an
    # adjacent kernel -- as a standalone op it is bounded by one full HBM
    # read+write of x regardless of in-kernel tuning.
    orig_shape = x.shape
    total = x.size
    itemsize = jnp.dtype(x.dtype).itemsize

    lanes, rows, tile_r = _choose_layout(total, itemsize)
    pad = rows * lanes - total  # only nonzero for ragged element counts

    flat = x.reshape(-1)
    if pad:  # static (Python-level) decision; rare fallback path
        flat = jnp.pad(flat, (0, pad))
    x2d = flat.reshape(rows, lanes)

    grid = (pl.cdiv(rows, tile_r),)
    out2d = pl.pallas_call(
        _nmb_kernel,
        out_shape=jax.ShapeDtypeStruct((rows, lanes), x.dtype),
        grid=grid,
        in_specs=[
            pl.BlockSpec(memory_space=pltpu.SMEM),            # scalar coefficient
            pl.BlockSpec((tile_r, lanes), lambda i: (i, 0)),   # input row tile
        ],
        out_specs=pl.BlockSpec((tile_r, lanes), lambda i: (i, 0)),
        compiler_params=pltpu.CompilerParams(
            dimension_semantics=("parallel",),
            vmem_limit_bytes=32 * 1024 * 1024,
        ),
        cost_estimate=pl.CostEstimate(
            flops=total,
            transcendentals=0,
            bytes_accessed=2 * total * itemsize
            + coefficient.size * jnp.dtype(coefficient.dtype).itemsize,
        ),
    )(coefficient, x2d)

    out = out2d.reshape(-1)
    if pad:
        out = out[:total]
    return out.reshape(orig_shape)


if __name__ == "__main__":
    # Deterministic parameter init, matching torch.nn.Parameter(torch.Tensor([0.0]))
    coefficient = jnp.array([0.0], dtype=jnp.float32)

    # Small NCHW input consistent with the module's forward.
    key = jax.random.PRNGKey(0)
    x = jax.random.normal(key, (2, 4, 16, 16), dtype=jnp.float32)

    y = nmb_forward(x, coefficient)
    jax.block_until_ready(y)

    # Reference check: coefficient * x (coefficient == 0 -> all zeros).
    ref = coefficient[0] * x
    assert y.shape == x.shape and y.dtype == x.dtype
    assert jnp.allclose(y, ref), "mismatch vs reference"

    # Extra check: nonzero coefficient on a larger input that exercises the
    # multi-tile (grid > 1) pipelined path.
    coefficient2 = jnp.array([1.5], dtype=jnp.float32)
    x2 = jax.random.normal(jax.random.PRNGKey(1), (2, 4, 1024, 1024), dtype=jnp.float32)
    y2 = nmb_forward(x2, coefficient2)
    jax.block_until_ready(y2)
    assert jnp.allclose(y2, coefficient2[0] * x2), "mismatch vs reference (multi-tile)"

    print("KERNEL_OK")
</pallas_src>

<mosaic_0001>
module attributes {stable_mosaic.version = 11 : i64} {
  func.func @_nmb_kernel(%arg0: i32, %arg1: memref<1xf32, #tpu.memory_space<smem>>, %arg2: memref<2x1024xf32, #tpu.memory_space<vmem>>, %arg3: memref<2x1024xf32, #tpu.memory_space<vmem>>) attributes {dimension_semantics = [#tpu.dimension_semantics<parallel>], iteration_bounds = array<i64: 1>, scalar_prefetch = 0 : i64, scratch_operands = 0 : i64, tpu.core_type = #tpu.core_type<tc>, window_params = [{transform_indices = @transform_0, window_bounds = array<i64: 1>}, {transform_indices = @transform_1, window_bounds = array<i64: 2, 1024>}, {transform_indices = @transform_2, window_bounds = array<i64: 2, 1024>}]} {
    %c0 = arith.constant 0 : index
    %0 = memref.load %arg1[%c0] : memref<1xf32, #tpu.memory_space<smem>>
    %c0_0 = arith.constant 0 : index
    %c0_1 = arith.constant 0 : index
    %1 = vector.load %arg2[%c0_0, %c0_1] : memref<2x1024xf32, #tpu.memory_space<vmem>>, vector<2x1024xf32>
    %2 = vector.broadcast %0 : f32 to vector<2x1024xf32>
    %3 = arith.mulf %2, %1 : vector<2x1024xf32>
    %c0_2 = arith.constant 0 : index
    %c0_3 = arith.constant 0 : index
    %4 = vector.load %arg3[%c0_2, %c0_3] : memref<2x1024xf32, #tpu.memory_space<vmem>>, vector<2x1024xf32>
    tpu.vector_store %arg3[%c0_2, %c0_3], %3 {strides = array<i32>} : memref<2x1024xf32, #tpu.memory_space<vmem>>, vector<2x1024xf32>,
    return
  }
  func.func @transform_0(%arg0: i32) -> i32 {
    %c0_i32 = arith.constant 0 : i32
    %c0_i32_0 = arith.constant 0 : i32
    return %c0_i32 : i32
  }
  func.func @transform_1(%arg0: i32) -> (i32, i32) {
    %c0_i32 = arith.constant 0 : i32
    %c0_i32_0 = arith.constant 0 : i32
    return %arg0, %c0_i32 : i32, i32
  }
  func.func @transform_2(%arg0: i32) -> (i32, i32) {
    %c0_i32 = arith.constant 0 : i32
    %c0_i32_0 = arith.constant 0 : i32
    return %arg0, %c0_i32 : i32, i32
  }
}

</mosaic_0001>

<bundles_post_ra>
// kernel: tpu_custom_call.1
= control target key start
LH: loop header
LB: loop body
LE: loop exit
PB: predicated region body
PF: predicated region fallthrough
CT: control target
= control target key end

     0   :  { %8 = vsyncpa [#allocation4], 0  ;;  %s142_s0 = inlined_call_operand.<no memory space> [shape: f32[1], index: 0, kind: input, shape index: {}]   ;;  %s143_s1 = inlined_call_operand.hbm [shape: f32[2,1024], index: 1, kind: input, shape index: {}]   ;;  %s144_s2 = inlined_call_operand.hbm [shape: f32[2,1024], index: 2, kind: output, shape index: {}]  }
   0x1   :  { %9 = vsyncpa [#allocation5], 0  ;;  %s98_s9 = smov [#allocation3]   ;;  %s50_s13 = scalar_lea.hbm %s143_s1, 256 }
   0x2   :  { %s18_s10 = sshll.u32 %s98_s9, 4  ;;  %p51_p0 = scmp.ne.s32.totalorder %s143_s1, %s50_s13  ;;  %s19_s10 = int_to_ptr.vmem [resolvable:$true] %s18_s10 }
   0x3   :  { %p54_p1 = scmp.lt.u32.totalorder %s50_s13, %s143_s1 }
   0x5   :  { %p56_p2 = pnand %p54_p1, %p51_p0 }
   0x7   :  { %59 = shalt.err (!%p56_p2)
}
   0x8   :  { %s60_s18 = scalar_lea.vmem %s19_s10, 256  ;;  %p65_p4 = scmp.lt.s32.totalorder %s19_s10, %s19_s10 }
   0x9   :  { %p61_p3 = scmp.ne.s32.totalorder %s19_s10, %s60_s18  ;;  %p66_p5 = scmp.lt.s32.totalorder %s60_s18, %s60_s18 }
   0xb   :  { %p67_p6 = por %p66_p5, %p65_p4 }
   0xd   :  { %p68_p7 = pnand %p67_p6, %p61_p3 }
   0xf   :  { %71 = shalt.err (!%p68_p7)
}
  0x10   :  { %21 = dma.hbm_to_vmem [thread:$0]  %s143_s1, 256, %s19_s10, [#allocation4]  }
  0x11   :  { %94 = dma.done.wait [#allocation4], 256  }
  0x12   :  { %95 = vsyncadd [#allocation4], 4294967040  ;;  %v28_v0 = vstv %s142_s0  ;;  %s99_s23 = smov [#allocation6]   ;;  %v26_v1 = vld [vmem:[#allocation3] sm:$0xff]  ;;  %v27_v2 = vld [vmem:[#allocation3 + $0x8] sm:$0xff] }
  0x13   :  { %s39_s24 = sshll.u32 %s99_s23, 4  ;;  %v29_v3 = vmul.f32 %v28_v0, %v26_v1  ;;  %v30_v4 = vmul.f32 %v28_v0, %v27_v2  ;;  %s40_s24 = int_to_ptr.vmem [resolvable:$true] %s39_s24 }
  0x14   :  { %s72_s25 = scalar_lea.vmem %s40_s24, 256  ;;  %p77_p9 = scmp.lt.s32.totalorder %s40_s24, %s40_s24 }
  0x15   :  { %31 = vst [vmem:[#allocation6] sm:$0xff] %v29_v3  ;;  %32 = vst [vmem:[#allocation6 + $0x8] sm:$0xff] %v30_v4  ;;  %p73_p8 = scmp.ne.s32.totalorder %s40_s24, %s72_s25  ;;  %p78_p10 = scmp.lt.s32.totalorder %s72_s25, %s72_s25 }
  0x17   :  { %p79_p11 = por %p78_p10, %p77_p9 }
  0x19   :  { %p80_p12 = pnand %p79_p11, %p73_p8 }
  0x1b   :  { %83 = shalt.err (!%p80_p12)
}
  0x1c   :  { %s84_s0 = scalar_lea.hbm %s144_s2, 256 }
  0x1d   :  { %p85_p13 = scmp.ne.s32.totalorder %s144_s2, %s84_s0  ;;  %p88_p0 = scmp.lt.u32.totalorder %s84_s0, %s144_s2 }
  0x1f   :  { %p90_p1 = pnand %p88_p0, %p85_p13 }
  0x21   :  { %93 = shalt.err (!%p90_p1)
}
  0x22   :  { %42 = dma.vmem_to_hbm [thread:$0]  %s40_s24, 256, %s144_s2, [#allocation5]  }
  0x23   :  { %96 = dma.done.wait [#allocation5], 256  }
  0x24   :  { %97 = vsyncadd [#allocation5], 4294967040 }
  0x25   :  { %46 = vsyncpa [#allocation4], 1 }
  0x26   :  { %47 = vsyncpa [#allocation5], 1 }

</bundles_post_ra>
